<compile_context>
chip_gen: v7x
topology: tpu7x:2x2x1
jax: 0.10.0
libtpu: 0.0.40
codegen_flags: <defaults>
</compile_context>

<pallas_src>
import math

import jax
import jax.numpy as jnp
from jax.experimental import pallas as pl
from jax.experimental.pallas import tpu as pltpu


def _hswish_kernel(x_ref, o_ref):
    x = x_ref[...]
    # x * relu6(x + 3) / 6
    o_ref[...] = x * jnp.clip(x + 3.0, 0.0, 6.0) / 6.0


def _ceil_div(a, b):
    return -(-a // b)


def hswish(x):
    """Elementwise HSwish over an arbitrarily-shaped float tensor."""
    orig_shape = x.shape
    dtype = x.dtype
    total = math.prod(orig_shape)

    LANE = 1024                      # lane-dense last dim (multiple of 128)
    MAX_BLOCK_ROWS = 512             # 512 x 1024 x 4B = 2 MiB per f32 block

    rows = _ceil_div(total, LANE)
    block_rows = min(MAX_BLOCK_ROWS, _ceil_div(rows, 8) * 8)  # multiple of 8
    rows_padded = _ceil_div(rows, block_rows) * block_rows
    padded_total = rows_padded * LANE

    x_flat = x.reshape(-1)
    if padded_total != total:
        x_flat = jnp.pad(x_flat, (0, padded_total - total))
    x2d = x_flat.reshape(rows_padded, LANE)

    grid = (rows_padded // block_rows,)

    out2d = pl.pallas_call(
        _hswish_kernel,
        out_shape=jax.ShapeDtypeStruct((rows_padded, LANE), dtype),
        grid_spec=pltpu.PrefetchScalarGridSpec(
            num_scalar_prefetch=0,
            grid=grid,
            in_specs=[pl.BlockSpec((block_rows, LANE), lambda i: (i, 0))],
            out_specs=pl.BlockSpec((block_rows, LANE), lambda i: (i, 0)),
        ),
        compiler_params=pltpu.CompilerParams(
            dimension_semantics=("parallel",),
            vmem_limit_bytes=64 << 20,
        ),
        cost_estimate=pl.CostEstimate(
            flops=5 * total,
            transcendentals=0,
            bytes_accessed=2 * total * jnp.dtype(dtype).itemsize,
        ),
    )(x2d)

    out_flat = out2d.reshape(-1)
    if padded_total != total:
        out_flat = out_flat[:total]
    return out_flat.reshape(orig_shape)


if __name__ == "__main__":
    # Small shape consistent with the module's typical NCHW activations.
    N, C, H, W = 2, 4, 16, 16

    key = jax.random.PRNGKey(0)
    # Scale so values cover the interesting range of the nonlinearity
    # (below -3, the [-3, 3] ramp, and above 3).
    x = 3.0 * jax.random.normal(key, (N, C, H, W), dtype=jnp.float32)

    y = hswish(x)
    y = jax.block_until_ready(y)

    # Reference: plain-JAX HSwish, same semantics as the PyTorch module.
    y_ref = x * jnp.clip(x + 3.0, 0.0, 6.0) / 6.0

    assert y.shape == x.shape
    assert jnp.allclose(y, y_ref, atol=1e-6, rtol=1e-6)

    print("KERNEL_OK")
</pallas_src>

<mosaic_0001>
module attributes {stable_mosaic.version = 11 : i64} {
  func.func @_hswish_kernel(%arg0: i32, %arg1: memref<8x1024xf32, #tpu.memory_space<vmem>>, %arg2: memref<8x1024xf32, #tpu.memory_space<vmem>>) attributes {dimension_semantics = [#tpu.dimension_semantics<parallel>], iteration_bounds = array<i64: 1>, scalar_prefetch = 0 : i64, scratch_operands = 0 : i64, tpu.core_type = #tpu.core_type<tc>, window_params = [{transform_indices = @transform_0, window_bounds = array<i64: 8, 1024>}, {transform_indices = @transform_1, window_bounds = array<i64: 8, 1024>}]} {
    %c0 = arith.constant 0 : index
    %c0_0 = arith.constant 0 : index
    %0 = vector.load %arg1[%c0, %c0_0] : memref<8x1024xf32, #tpu.memory_space<vmem>>, vector<8x1024xf32>
    %cst = arith.constant 3.000000e+00 : f32
    %1 = vector.broadcast %cst : f32 to vector<8x1024xf32>
    %2 = arith.addf %0, %1 : vector<8x1024xf32>
    %cst_1 = arith.constant 0.000000e+00 : f32
    %cst_2 = arith.constant 6.000000e+00 : f32
    %3 = vector.broadcast %cst_1 : f32 to vector<8x1024xf32>
    %4 = arith.maximumf %3, %2 : vector<8x1024xf32>
    %5 = vector.broadcast %cst_2 : f32 to vector<8x1024xf32>
    %6 = arith.minimumf %5, %4 : vector<8x1024xf32>
    %7 = arith.mulf %0, %6 : vector<8x1024xf32>
    %cst_3 = arith.constant 6.000000e+00 : f32
    %8 = vector.broadcast %cst_3 : f32 to vector<8x1024xf32>
    %9 = arith.divf %7, %8 : vector<8x1024xf32>
    %c0_4 = arith.constant 0 : index
    %c0_5 = arith.constant 0 : index
    %10 = vector.load %arg2[%c0_4, %c0_5] : memref<8x1024xf32, #tpu.memory_space<vmem>>, vector<8x1024xf32>
    tpu.vector_store %arg2[%c0_4, %c0_5], %9 {strides = array<i32>} : memref<8x1024xf32, #tpu.memory_space<vmem>>, vector<8x1024xf32>,
    return
  }
  func.func @transform_0(%arg0: i32) -> (i32, i32) {
    %c0_i32 = arith.constant 0 : i32
    %c0_i32_0 = arith.constant 0 : i32
    return %arg0, %c0_i32 : i32, i32
  }
  func.func @transform_1(%arg0: i32) -> (i32, i32) {
    %c0_i32 = arith.constant 0 : i32
    %c0_i32_0 = arith.constant 0 : i32
    return %arg0, %c0_i32 : i32, i32
  }
}

</mosaic_0001>

<bundles_post_ra>
// kernel: tpu_custom_call.1
= control target key start
LH: loop header
LB: loop body
LE: loop exit
PB: predicated region body
PF: predicated region fallthrough
CT: control target
= control target key end

     0   :  { %6 = vsyncpa [#allocation3], 0  ;;  %s179_s0 = inlined_call_operand.hbm [shape: f32[8,1024], index: 0, kind: input, shape index: {}]   ;;  %s180_s1 = inlined_call_operand.hbm [shape: f32[8,1024], index: 1, kind: output, shape index: {}]  }
   0x1   :  { %7 = vsyncpa [#allocation4], 0  ;;  %s143_s6 = smov [#allocation2]   ;;  %s95_s10 = scalar_lea.hbm %s179_s0, 1024 }
   0x2   :  { %s14_s7 = sshll.u32 %s143_s6, 4  ;;  %p96_p0 = scmp.ne.s32.totalorder %s179_s0, %s95_s10  ;;  %s15_s7 = int_to_ptr.vmem [resolvable:$true] %s14_s7 }
   0x3   :  { %p99_p1 = scmp.lt.u32.totalorder %s95_s10, %s179_s0 }
   0x5   :  { %p101_p2 = pnand %p99_p1, %p96_p0 }
   0x7   :  { %104 = shalt.err (!%p101_p2)
}
   0x8   :  { %s105_s15 = scalar_lea.vmem %s15_s7, 1024  ;;  %p110_p4 = scmp.lt.s32.totalorder %s15_s7, %s15_s7 }
   0x9   :  { %p106_p3 = scmp.ne.s32.totalorder %s15_s7, %s105_s15  ;;  %p111_p5 = scmp.lt.s32.totalorder %s105_s15, %s105_s15 }
   0xb   :  { %p112_p6 = por %p111_p5, %p110_p4 }
   0xd   :  { %p113_p7 = pnand %p112_p6, %p106_p3 }
   0xf   :  { %116 = shalt.err (!%p113_p7)
}
  0x10   :  { %17 = dma.hbm_to_vmem [thread:$0]  %s179_s0, 1024, %s15_s7, [#allocation3]  }
  0x11   :  { %139 = dma.done.wait [#allocation3], 1024  }
  0x12   :  { %140 = vsyncadd [#allocation3], 4294966272  ;;  %v21_v0 = vld [vmem:[#allocation2] sm:$0xff]  ;;  %v22_v1 = vld [vmem:[#allocation2 + $0x8] sm:$0xff]  ;;  %s144_s0 = smov [#allocation5]  }
  0x13   :  { %v23_v2 = vld [vmem:[#allocation2 + $0x10] sm:$0xff]  ;;  %v29_v3 = vadd.f32 3.0, %v21_v0  ;;  %v30_v4 = vadd.f32 3.0, %v22_v1  ;;  %v24_v6 = vld [vmem:[#allocation2 + $0x18] sm:$0xff]  ;;  %v25_v7 = vld [vmem:[#allocation2 + $0x20] sm:$0xff]  ;;  %s84_s18 = sshll.u32 %s144_s0, 4  ;;  %s85_s18 = int_to_ptr.vmem [resolvable:$true] %s84_s18 }
  0x14   :  { %v31_v5 = vadd.f32 3.0, %v23_v2  ;;  %v26_v8 = vld [vmem:[#allocation2 + $0x28] sm:$0xff]  ;;  %v32_v9 = vadd.f32 3.0, %v24_v6  ;;  %v33_v10 = vadd.f32 3.0, %v25_v7  ;;  %v27_v12 = vld [vmem:[#allocation2 + $0x30] sm:$0xff]  ;;  %v28_v13 = vld [vmem:[#allocation2 + $0x38] sm:$0xff]  ;;  %p122_p9 = scmp.lt.s32.totalorder %s85_s18, %s85_s18 }
  0x15   :  { %v34_v11 = vadd.f32 3.0, %v26_v8  ;;  %v37_v14 = vmax.f32 %v29_v3, 0.0  ;;  %v38_v15 = vmax.f32 %v30_v4, 0.0  ;;  %v35_v17 = vadd.f32 3.0, %v27_v12  ;;  %s117_s19 = scalar_lea.vmem %s85_s18, 1024 }
  0x16   :  { %v39_v16 = vmax.f32 %v31_v5, 0.0  ;;  %v40_v18 = vmax.f32 %v32_v9, 0.0  ;;  %v41_v19 = vmax.f32 %v33_v10, 0.0  ;;  %v36_v21 = vadd.f32 3.0, %v28_v13  ;;  %p118_p8 = scmp.ne.s32.totalorder %s85_s18, %s117_s19  ;;  %p123_p10 = scmp.lt.s32.totalorder %s117_s19, %s117_s19 }
  0x17   :  { %v42_v20 = vmax.f32 %v34_v11, 0.0  ;;  %v45_v22 = vmin.f32 %v37_v14, 6.0  ;;  %v46_v23 = vmin.f32 %v38_v15, 6.0  ;;  %v43_v25 = vmax.f32 %v35_v17, 0.0 }
  0x18   :  { %v47_v24 = vmin.f32 %v39_v16, 6.0  ;;  %v48_v26 = vmin.f32 %v40_v18, 6.0  ;;  %v49_v27 = vmin.f32 %v41_v19, 6.0  ;;  %v44_v29 = vmax.f32 %v36_v21, 0.0  ;;  %p124_p11 = por %p123_p10, %p122_p9 }
  0x19   :  { %v50_v28 = vmin.f32 %v42_v20, 6.0  ;;  %v53_v30 = vmul.f32 %v45_v22, %v21_v0  ;;  %v54_v31 = vmul.f32 %v46_v23, %v22_v1  ;;  %v51_v33 = vmin.f32 %v43_v25, 6.0 }
  0x1a   :  { %v55_v32 = vmul.f32 %v47_v24, %v23_v2  ;;  %v56_v34 = vmul.f32 %v48_v26, %v24_v6  ;;  %v57_v35 = vmul.f32 %v49_v27, %v25_v7  ;;  %v52_v37 = vmin.f32 %v44_v29, 6.0  ;;  %p125_p12 = pnand %p124_p11, %p118_p8 }
  0x1b   :  { %v58_v36 = vmul.f32 %v50_v28, %v26_v8  ;;  %v62_v38 = vmul.f32 0.16666667, %v53_v30  ;;  %v63_v39 = vmul.f32 0.16666667, %v54_v31  ;;  %v59_v41 = vmul.f32 %v51_v33, %v27_v12 }
  0x1c   :  { %v64_v40 = vmul.f32 0.16666667, %v55_v32  ;;  %v65_v42 = vmul.f32 0.16666667, %v56_v34  ;;  %v66_v43 = vmul.f32 0.16666667, %v57_v35  ;;  %v60_v45 = vmul.f32 %v52_v37, %v28_v13 }
  0x1d   :  { %v67_v44 = vmul.f32 0.16666667, %v58_v36  ;;  %70 = vst [vmem:[#allocation5] sm:$0xff] %v62_v38  ;;  %71 = vst [vmem:[#allocation5 + $0x8] sm:$0xff] %v63_v39  ;;  %v68_v46 = vmul.f32 0.16666667, %v59_v41 }
  0x1e   :  { %72 = vst [vmem:[#allocation5 + $0x10] sm:$0xff] %v64_v40  ;;  %73 = vst [vmem:[#allocation5 + $0x18] sm:$0xff] %v65_v42  ;;  %v69_v47 = vmul.f32 0.16666667, %v60_v45 }
  0x1f   :  { %74 = vst [vmem:[#allocation5 + $0x20] sm:$0xff] %v66_v43  ;;  %75 = vst [vmem:[#allocation5 + $0x28] sm:$0xff] %v67_v44 }
  0x20   :  { %76 = vst [vmem:[#allocation5 + $0x30] sm:$0xff] %v68_v46  ;;  %77 = vst [vmem:[#allocation5 + $0x38] sm:$0xff] %v69_v47 }
  0x21   :  { %128 = shalt.err (!%p125_p12)
}
  0x22   :  { %s129_s22 = scalar_lea.hbm %s180_s1, 1024 }
  0x23   :  { %p130_p13 = scmp.ne.s32.totalorder %s180_s1, %s129_s22  ;;  %p133_p0 = scmp.lt.u32.totalorder %s129_s22, %s180_s1 }
  0x25   :  { %p135_p1 = pnand %p133_p0, %p130_p13 }
  0x27   :  { %138 = shalt.err (!%p135_p1)
}
  0x28   :  { %87 = dma.vmem_to_hbm [thread:$0]  %s85_s18, 1024, %s180_s1, [#allocation4]  }
  0x29   :  { %141 = dma.done.wait [#allocation4], 1024  }
  0x2a   :  { %142 = vsyncadd [#allocation4], 4294966272 }
  0x2b   :  { %91 = vsyncpa [#allocation3], 1 }
  0x2c   :  { %92 = vsyncpa [#allocation4], 1 }

</bundles_post_ra>
